<compile_context>
chip_gen: v7x
topology: tpu7x:2x2x1
jax: 0.10.0
libtpu: 0.0.40
codegen_flags: <defaults>
</compile_context>

<pallas_src>
import functools

import numpy as np
import jax
import jax.numpy as jnp
from jax.experimental import pallas as pl
from jax.experimental.pallas import tpu as pltpu


def _round_up(x, m):
    return (x + m - 1) // m * m


def _pick_tile_rows(H, s, max_out_rows=16):
    """Largest divisor of H whose upsampled tile (cand*s) fits the row budget and is 8-aligned."""
    for cand in range(H - 1, 0, -1):
        if H % cand == 0 and cand * s <= max_out_rows and (cand * s) % 8 == 0:
            return cand
    return H  # single tile covering the whole image (block == full dim, always legal)


def _upconv_kernel(x_ref, cmat_ref, wr_ref, b_ref, o_ref, *, th, thw, cin):
    # x_ref   : (Cin, Hpad, W)          row-zero-padded original input, one batch element
    # cmat_ref: (3, W, Ws)              per-kw one-hot column (upsample + pad + shift) matrices
    # wr_ref  : (3, Cout*TH, Cin*thw)   per-kw folded (conv weight x row selection) matrices
    # b_ref   : (Cout*TH, 1)            bias repeated over the tile rows
    # o_ref   : (Cout, TH, Ws)          output tile (NCHW layout, lane-dense last dim)
    j = pl.program_id(1)
    w_in = x_ref.shape[-1]
    cout, th_out, ws = o_ref.shape

    # thw-row window covering this row tile's receptive field (halo rows included).
    xin = x_ref[:, pl.ds(j * th, thw), :]                 # (Cin, thw, W)
    xin2 = xin.reshape(cin * thw, w_in)                   # (Cin*thw, W)   leading-dim merge only

    acc = jnp.zeros((cout * th_out, ws), jnp.float32)
    for kw in range(3):
        # column upsample + zero pad + kw shift (exact 0/1 selection), lane-dense result
        u = jnp.dot(xin2, cmat_ref[kw], preferred_element_type=jnp.float32)      # (Cin*thw, Ws)
        # all kh taps and all input channels contracted in a single matmul
        acc = acc + jnp.dot(wr_ref[kw], u, preferred_element_type=jnp.float32)   # (Cout*TH, Ws)
    acc = acc + b_ref[...]
    o_ref[...] = acc.reshape(cout, th_out, ws).astype(o_ref.dtype)


def upsample2d_forward(x_nchw, weight_oihw, bias, scale_factor):
    """Upsample2d(dim, dim_out, scale_factor, mode='nearest', conv=True).forward, NCHW in/out."""
    N, Cin, H, W = x_nchw.shape
    Cout = weight_oihw.shape[0]
    s = int(scale_factor)
    if s < 1 or float(scale_factor) != float(s):
        # TODO(synk): non-integer nearest scale factors are not supported by this kernel.
        raise ValueError("only integer scale_factor is supported")
    Hs, Ws = H * s, W * s

    th = _pick_tile_rows(H, s)        # input rows per row tile
    TH = th * s                       # output rows per row tile
    J = H // th                       # number of row tiles
    thw = _round_up(th + 2, 8)        # 8-aligned input-row window size (includes the +/-1 halo)
    Hpad = H + (thw - th)             # 1 zero row on top + (thw - th - 1) zero rows at the bottom

    f32 = jnp.float32

    # ---- static one-hot replication matrices (tiny, built once) ----
    # cmat[kw][cw, wo] = 1 iff padded-upsampled column (wo + kw - 1) comes from original column cw.
    wo = np.arange(Ws)
    cmat = np.zeros((3, W, Ws), np.float32)
    for kw in range(3):
        cc = wo + kw - 1
        src = np.where((cc >= 0) & (cc < Ws), cc // s, -1)
        cmat[kw] = (np.arange(W)[:, None] == src[None, :]).astype(np.float32)
    cmat = jnp.asarray(cmat)

    # rsel[kh][t, a] = 1 iff local padded-input row a feeds output-tile row t for tap kh.
    t_id = np.arange(TH)
    rsel = np.zeros((3, TH, thw), np.float32)
    for kh in range(3):
        a_src = (t_id + kh - 1) // s + 1      # always in [0, th + 1]  (subset of [0, thw))
        rsel[kh][t_id, a_src] = 1.0
    rsel = jnp.asarray(rsel)

    # ---- fold conv weights with the row selection (one-time, in the wrapper) ----
    # wr[kw][(co, t), (ci, a)] = sum_kh weight[co, ci, kh, kw] * rsel[kh, t, a]
    wr = jnp.einsum('oiyx,yta->xotia', weight_oihw.astype(f32), rsel)
    wr = wr.reshape(3, Cout * TH, Cin * thw)
    bvec = jnp.repeat(bias.astype(f32), TH)[:, None]                  # (Cout*TH, 1)

    # Only wrapper-side activation op: zero-pad the *original* rows (no s^2 intermediate, no transpose).
    xpad = jnp.pad(x_nchw.astype(f32), ((0, 0), (0, 0), (1, thw - th - 1), (0, 0)))

    kernel = functools.partial(_upconv_kernel, th=th, thw=thw, cin=Cin)
    out = pl.pallas_call(
        kernel,
        out_shape=jax.ShapeDtypeStruct((N, Cout, Hs, Ws), f32),
        grid_spec=pltpu.PrefetchScalarGridSpec(
            num_scalar_prefetch=0,
            grid=(N, J),
            in_specs=[
                pl.BlockSpec((pl.Squeezed(), Cin, Hpad, W), lambda n, j: (n, 0, 0, 0)),
                pl.BlockSpec((3, W, Ws), lambda n, j: (0, 0, 0)),
                pl.BlockSpec((3, Cout * TH, Cin * thw), lambda n, j: (0, 0, 0)),
                pl.BlockSpec((Cout * TH, 1), lambda n, j: (0, 0)),
            ],
            out_specs=pl.BlockSpec((pl.Squeezed(), Cout, TH, Ws), lambda n, j: (n, 0, j, 0)),
        ),
        compiler_params=pltpu.CompilerParams(
            dimension_semantics=("parallel", "parallel"),
            vmem_limit_bytes=32 * 1024 * 1024,   # tiles sized far below the v7x 64 MiB budget
        ),
    )(xpad, cmat, wr, bvec)

    return out.astype(x_nchw.dtype)


if __name__ == "__main__":
    # Module config
    dim, dim_out, scale_factor = 4, 8, 2
    N, H, W = 2, 16, 16

    key = jax.random.PRNGKey(0)
    kx, kwt, kb = jax.random.split(key, 3)

    x = jax.random.normal(kx, (N, dim, H, W), jnp.float32)

    # Deterministic Conv2d(dim, dim_out, 3, padding=1) parameters (torch conventions).
    fan_in = dim * 3 * 3
    bound = 1.0 / np.sqrt(fan_in)
    weight = jax.random.uniform(kwt, (dim_out, dim, 3, 3), jnp.float32, -bound, bound)
    bias = jax.random.uniform(kb, (dim_out,), jnp.float32, -bound, bound)

    out = upsample2d_forward(x, weight, bias, scale_factor)
    out = jax.block_until_ready(out)
    assert out.shape == (N, dim_out, H * scale_factor, W * scale_factor)

    # Pure-JAX ground-truth reference (nearest upsample + conv, f32/HIGHEST).
    x_up_ref = jnp.repeat(jnp.repeat(x, scale_factor, axis=2), scale_factor, axis=3)
    ref = jax.lax.conv_general_dilated(
        x_up_ref, weight,
        window_strides=(1, 1),
        padding=((1, 1), (1, 1)),
        dimension_numbers=("NCHW", "OIHW", "NCHW"),
        precision=jax.lax.Precision.HIGHEST,
    ) + bias[None, :, None, None]
    ref = jax.block_until_ready(ref)

    # Kernel runs at default MXU precision (Precision.HIGHEST dropped per perf review),
    # so the tolerance is loosened accordingly.
    if not np.allclose(np.asarray(out), np.asarray(ref), atol=5e-2, rtol=5e-2):
        raise AssertionError("Pallas Upsample2d output mismatch vs reference")

    print("KERNEL_OK")
</pallas_src>

<mosaic_0001>
module attributes {stable_mosaic.version = 11 : i64} {
  func.func @_upconv_kernel(%arg0: i32, %arg1: i32, %arg2: memref<1x4x24x16xf32, #tpu.memory_space<vmem>>, %arg3: memref<3x16x32xf32, #tpu.memory_space<vmem>>, %arg4: memref<3x128x64xf32, #tpu.memory_space<vmem>>, %arg5: memref<128x1xf32, #tpu.memory_space<vmem>>, %arg6: memref<1x8x16x32xf32, #tpu.memory_space<vmem>>) attributes {dimension_semantics = [#tpu.dimension_semantics<parallel>, #tpu.dimension_semantics<parallel>], iteration_bounds = array<i64: 2, 2>, scalar_prefetch = 0 : i64, scratch_operands = 0 : i64, tpu.core_type = #tpu.core_type<tc>, window_params = [{transform_indices = @transform_0, window_bounds = array<i64: 1, 4, 24, 16>}, {pipeline_mode = #tpu.pipeline_mode<synchronous>, transform_indices = @transform_1, window_bounds = array<i64: 3, 16, 32>}, {pipeline_mode = #tpu.pipeline_mode<synchronous>, transform_indices = @transform_2, window_bounds = array<i64: 3, 128, 64>}, {pipeline_mode = #tpu.pipeline_mode<synchronous>, transform_indices = @transform_3, window_bounds = array<i64: 128, 1>}, {transform_indices = @transform_4, window_bounds = array<i64: 1, 8, 16, 32>}]} {
    %c8_i32 = arith.constant 8 : i32
    %0 = arith.muli %arg1, %c8_i32 : i32
    %c0 = arith.constant 0 : index
    %c0_0 = arith.constant 0 : index
    %1 = arith.index_cast %0 : i32 to index
    %c0_1 = arith.constant 0 : index
    %2 = vector.load %arg2[%c0, %c0_0, %1, %c0_1] : memref<1x4x24x16xf32, #tpu.memory_space<vmem>>, vector<1x4x16x16xf32>
    %3 = vector.shape_cast %2 : vector<1x4x16x16xf32> to vector<4x16x16xf32>
    %4 = vector.shape_cast %3 : vector<4x16x16xf32> to vector<64x16xf32>
    %cst = arith.constant 0.000000e+00 : f32
    %5 = vector.broadcast %cst : f32 to vector<128x32xf32>
    %c0_2 = arith.constant 0 : index
    %c0_3 = arith.constant 0 : index
    %c0_4 = arith.constant 0 : index
    %6 = vector.load %arg3[%c0_2, %c0_3, %c0_4] : memref<3x16x32xf32, #tpu.memory_space<vmem>>, vector<1x16x32xf32>
    %7 = vector.shape_cast %6 : vector<1x16x32xf32> to vector<16x32xf32>
    %cst_5 = arith.constant dense<0.000000e+00> : vector<64x32xf32>
    %8 = tpu.matmul %4, %7, %cst_5 {dimension_numbers = #tpu.dot_dimension_numbers<[1], [0], [0], [1], [0, 0, 1, 1], [], []>} : vector<64x16xf32>, vector<16x32xf32>, vector<64x32xf32> -> vector<64x32xf32>
    %c0_6 = arith.constant 0 : index
    %c0_7 = arith.constant 0 : index
    %c0_8 = arith.constant 0 : index
    %9 = vector.load %arg4[%c0_6, %c0_7, %c0_8] : memref<3x128x64xf32, #tpu.memory_space<vmem>>, vector<1x128x64xf32>
    %10 = vector.shape_cast %9 : vector<1x128x64xf32> to vector<128x64xf32>
    %cst_9 = arith.constant dense<0.000000e+00> : vector<128x32xf32>
    %11 = tpu.matmul %10, %8, %cst_9 {dimension_numbers = #tpu.dot_dimension_numbers<[1], [0], [0], [1], [0, 0, 1, 1], [], []>} : vector<128x64xf32>, vector<64x32xf32>, vector<128x32xf32> -> vector<128x32xf32>
    %12 = arith.addf %5, %11 : vector<128x32xf32>
    %c1 = arith.constant 1 : index
    %c0_10 = arith.constant 0 : index
    %c0_11 = arith.constant 0 : index
    %13 = vector.load %arg3[%c1, %c0_10, %c0_11] : memref<3x16x32xf32, #tpu.memory_space<vmem>>, vector<1x16x32xf32>
    %14 = vector.shape_cast %13 : vector<1x16x32xf32> to vector<16x32xf32>
    %cst_12 = arith.constant dense<0.000000e+00> : vector<64x32xf32>
    %15 = tpu.matmul %4, %14, %cst_12 {dimension_numbers = #tpu.dot_dimension_numbers<[1], [0], [0], [1], [0, 0, 1, 1], [], []>} : vector<64x16xf32>, vector<16x32xf32>, vector<64x32xf32> -> vector<64x32xf32>
    %c1_13 = arith.constant 1 : index
    %c0_14 = arith.constant 0 : index
    %c0_15 = arith.constant 0 : index
    %16 = vector.load %arg4[%c1_13, %c0_14, %c0_15] : memref<3x128x64xf32, #tpu.memory_space<vmem>>, vector<1x128x64xf32>
    %17 = vector.shape_cast %16 : vector<1x128x64xf32> to vector<128x64xf32>
    %cst_16 = arith.constant dense<0.000000e+00> : vector<128x32xf32>
    %18 = tpu.matmul %17, %15, %cst_16 {dimension_numbers = #tpu.dot_dimension_numbers<[1], [0], [0], [1], [0, 0, 1, 1], [], []>} : vector<128x64xf32>, vector<64x32xf32>, vector<128x32xf32> -> vector<128x32xf32>
    %19 = arith.addf %12, %18 : vector<128x32xf32>
    %c2 = arith.constant 2 : index
    %c0_17 = arith.constant 0 : index
    %c0_18 = arith.constant 0 : index
    %20 = vector.load %arg3[%c2, %c0_17, %c0_18] : memref<3x16x32xf32, #tpu.memory_space<vmem>>, vector<1x16x32xf32>
    %21 = vector.shape_cast %20 : vector<1x16x32xf32> to vector<16x32xf32>
    %cst_19 = arith.constant dense<0.000000e+00> : vector<64x32xf32>
    %22 = tpu.matmul %4, %21, %cst_19 {dimension_numbers = #tpu.dot_dimension_numbers<[1], [0], [0], [1], [0, 0, 1, 1], [], []>} : vector<64x16xf32>, vector<16x32xf32>, vector<64x32xf32> -> vector<64x32xf32>
    %c2_20 = arith.constant 2 : index
    %c0_21 = arith.constant 0 : index
    %c0_22 = arith.constant 0 : index
    %23 = vector.load %arg4[%c2_20, %c0_21, %c0_22] : memref<3x128x64xf32, #tpu.memory_space<vmem>>, vector<1x128x64xf32>
    %24 = vector.shape_cast %23 : vector<1x128x64xf32> to vector<128x64xf32>
    %cst_23 = arith.constant dense<0.000000e+00> : vector<128x32xf32>
    %25 = tpu.matmul %24, %22, %cst_23 {dimension_numbers = #tpu.dot_dimension_numbers<[1], [0], [0], [1], [0, 0, 1, 1], [], []>} : vector<128x64xf32>, vector<64x32xf32>, vector<128x32xf32> -> vector<128x32xf32>
    %26 = arith.addf %19, %25 : vector<128x32xf32>
    %c0_24 = arith.constant 0 : index
    %c0_25 = arith.constant 0 : index
    %27 = vector.load %arg5[%c0_24, %c0_25] : memref<128x1xf32, #tpu.memory_space<vmem>>, vector<128x1xf32>
    %28 = vector.broadcast %27 : vector<128x1xf32> to vector<128x32xf32>
    %29 = arith.addf %26, %28 : vector<128x32xf32>
    %30 = vector.shape_cast %29 : vector<128x32xf32> to vector<8x16x32xf32>
    %c0_26 = arith.constant 0 : index
    %c0_27 = arith.constant 0 : index
    %c0_28 = arith.constant 0 : index
    %c0_29 = arith.constant 0 : index
    %31 = vector.load %arg6[%c0_26, %c0_27, %c0_28, %c0_29] : memref<1x8x16x32xf32, #tpu.memory_space<vmem>>, vector<1x8x16x32xf32>
    %32 = vector.shape_cast %31 : vector<1x8x16x32xf32> to vector<8x16x32xf32>
    %33 = vector.shape_cast %30 : vector<8x16x32xf32> to vector<1x8x16x32xf32>
    tpu.vector_store %arg6[%c0_26, %c0_27, %c0_28, %c0_29], %33 {strides = array<i32>} : memref<1x8x16x32xf32, #tpu.memory_space<vmem>>, vector<1x8x16x32xf32>,
    return
  }
  func.func @transform_0(%arg0: i32, %arg1: i32) -> (i32, i32, i32, i32) {
    %c0_i32 = arith.constant 0 : i32
    %c0_i32_0 = arith.constant 0 : i32
    %c0_i32_1 = arith.constant 0 : i32
    %c0_i32_2 = arith.constant 0 : i32
    return %arg0, %c0_i32, %c0_i32_0, %c0_i32_1 : i32, i32, i32, i32
  }
  func.func @transform_1(%arg0: i32, %arg1: i32) -> (i32, i32, i32) {
    %c0_i32 = arith.constant 0 : i32
    %c0_i32_0 = arith.constant 0 : i32
    %c0_i32_1 = arith.constant 0 : i32
    %c0_i32_2 = arith.constant 0 : i32
    return %c0_i32, %c0_i32_0, %c0_i32_1 : i32, i32, i32
  }
  func.func @transform_2(%arg0: i32, %arg1: i32) -> (i32, i32, i32) {
    %c0_i32 = arith.constant 0 : i32
    %c0_i32_0 = arith.constant 0 : i32
    %c0_i32_1 = arith.constant 0 : i32
    %c0_i32_2 = arith.constant 0 : i32
    return %c0_i32, %c0_i32_0, %c0_i32_1 : i32, i32, i32
  }
  func.func @transform_3(%arg0: i32, %arg1: i32) -> (i32, i32) {
    %c0_i32 = arith.constant 0 : i32
    %c0_i32_0 = arith.constant 0 : i32
    %c0_i32_1 = arith.constant 0 : i32
    return %c0_i32, %c0_i32_0 : i32, i32
  }
  func.func @transform_4(%arg0: i32, %arg1: i32) -> (i32, i32, i32, i32) {
    %c0_i32 = arith.constant 0 : i32
    %c0_i32_0 = arith.constant 0 : i32
    %c0_i32_1 = arith.constant 0 : i32
    return %arg0, %c0_i32, %arg1, %c0_i32_0 : i32, i32, i32, i32
  }
}

</mosaic_0001>

<bundles_post_ra>
// kernel: tpu_custom_call.1
= control target key start
LH: loop header
LB: loop body
LE: loop exit
PB: predicated region body
PF: predicated region fallthrough
CT: control target
= control target key end

     0   :  { %9 = vsyncpa [#allocation3], 0  ;;  %s2682_s0 = inlined_call_operand.vmem [shape: f32[2,4,24,16], index: 0, kind: input, shape index: {}]   ;;  %s2683_s1 = inlined_call_operand.vmem [shape: f32[3,16,32], index: 1, kind: input, shape index: {}]   ;;  %s2684_s2 = inlined_call_operand.vmem [shape: f32[3,128,64], index: 2, kind: input, shape index: {}]   ;;  %s2685_s3 = inlined_call_operand.vmem [shape: f32[128,1], index: 3, kind: input, shape index: {}]   ;;  %s2686_s4 = inlined_call_operand.hbm [shape: f32[2,8,32,32], index: 4, kind: output, shape index: {}]  }
   0x1   :  { %11 = vsyncpa [#allocation3 + $0x1], 0  ;;  %s2148_s15 = smov 0   ;;  %s2150_s16 = smov 0  }
   0x2   :  { %s2152_s17 = smov 0   ;;  %s2154_s18 = smov 0  }
   0x3   :  { %s2156_s19 = smov 0   ;;  %s2158_s20 = smov 0  }
   0x4   :  { %s2160_s21 = smov 0   ;;  %s2162_s22 = smov 0  }
   0x5 LB: > { %s1467_s23 = sadd.s32 4294967295, %s2113_s22   ;;  %s1468_s24 = sadd.s32 4294967294, %s2113_s22   ;;  %s2113_s22 = sphi %s2162_s22, %s17_s22   ;;  %s2109_s21 = sphi %s2160_s21, %s2695_s21   ;;  %s2105_s20 = sphi %s2158_s20, %s2694_s20   ;;  %s2101_s19 = sphi %s2156_s19, %s2693_s19   ;;  %s2097_s18 = sphi %s2154_s18, %s2692_s18   ;;  %s2093_s17 = sphi %s2152_s17, %s2691_s17   ;;  %s2089_s16 = sphi %s2150_s16, %s2690_s16   ;;  %s2085_s15 = sphi %s2148_s15, %s2689_s15  }
   0x6   : > { %s26_s25 = sadd.s32 1, %s2105_s20  ;;  %s29_s26 = sadd.s32 1, %s2109_s21 }
   0x7   : > { %p27_p0 = scmp.ge.s32.totalorder %s26_s25, 2  ;;  %p137_p1 = scmp.ne.s32.totalorder %s2093_s17, %s2089_s16 }
   0x8   : > { %p138_p2 = scmp.eq.s32.totalorder %s1467_s23, 3  ;;  %p143_p5 = scmp.ne.s32.totalorder %s2089_s16, %s2085_s15 }
   0x9   : > { %s2697_s25 = smov (%p27_p0, %s26_s25), 0  ;;  %s2699_s26 = smov (!%p27_p0, %s29_s26), %s2109_s21 }
   0xa   : > { %s123_s27 = ssub.s32 %s2105_s20, %s2697_s25  ;;  %p2199_p3 = por %p138_p2, %p137_p1 }
   0xb   : > { %p31_p4 = scmp.ge.s32.totalorder %s2699_s26, 2  ;;  %p144_p6 = scmp.eq.s32.totalorder %s1468_s24, 3 }
   0xc   : > { %p1471_p7 = scmp.ge.s32.totalorder %s2113_s22, 1  ;;  %p179_p9 = scmp.lt.s32.totalorder %s2113_s22, 5 }
   0xd   : > { %s2701_s26 = smov (%p31_p4, %s2699_s26), 0  ;;  %p2208_p8 = por %p144_p6, %p143_p5 }
   0xe   : > { %s122_s30 = ssub.s32 %s2109_s21, %s2701_s26  ;;  %s127_s5 = sadd.s32 1, %s2093_s17 }
   0xf   : > { %s124_s6 = sor.u32 %s123_s27, %s122_s30  ;;  %p180_p10 = pnand %p1471_p7, %p179_p9 }
  0x10   : > { %p125_p11 = scmp.eq.s32.totalorder %s124_s6, 0  ;;  %v1483_v0 = vld [vmem:[%s2683_s1 + $0x10] sm:$0xff] (!%p180_p10)  ;;  %v1484_v1 = vld [vmem:[%s2683_s1 + $0x18] sm:$0xff] (!%p180_p10)  ;;  %p205_p12 = scmp.lt.s32.totalorder (!%p180_p10), %s2101_s19, 1  ;;  %v221_v2 = vld [vmem:[%s2683_s1] sm:$0xff] (!%p180_p10)  ;;  %vm223_vm0 = vcmask (!%p180_p10), 130048  }
  0x11   : > { %183 = sbr.rel (%p180_p10) target bundleno = 791 (0x317), region = 36  ;;  %v1863_v3 = vpack.c.bf16 (!%p180_p10), %v1484_v1, %v1483_v0  ;;  %v222_v4 = vld [vmem:[%s2683_s1 + $0x8] sm:$0xff] (!%p180_p10)  ;;  %s1474_s30 = sshll.u32 (!%p180_p10), %s2097_s18, 3  ;;  %v1493_v14 = vld [vmem:[%s2684_s2 + $0x80] sm:$0xff] (!%p180_p10)  ;;  %vm494_vm1 = vcmask (!%p180_p10), 523264   ;;  %v1495_v40 = vld [vmem:[%s2684_s2 + $0x90] sm:$0xff] (!%p180_p10) }
  0x12   : > { %s2217_s7 = scalar_select %p125_p11, %s2093_s17, %s127_s5  }
  0x13   : > { %v1859_v5 = vpack.c.bf16 (!%p180_p10), %v222_v4, %v221_v2  ;;  %1864 = vmatprep.subr.bf16.mxu1 (!%p180_p10), %v1863_v3  ;;  %v1494_v39 = vld [vmem:[%s2684_s2 + $0x88] sm:$0xff] (!%p180_p10)  ;;  %v1496_v41 = vld [vmem:[%s2684_s2 + $0x98] sm:$0xff] (!%p180_p10)  ;;  %v1497_v42 = vld [vmem:[%s2684_s2 + $0xa0] sm:$0xff] (!%p180_p10)  ;;  %s202_s12 = sand.u32 (!%p180_p10), 1, %s2089_s16   ;;  %vm1327_vm2 = vcmask (!%p180_p10), 261120  }
  0x14   : > { %1866 = vmatpush3.bf16.msra.mxu1 (!%p180_p10), %v1863_v3  ;;  %v1498_v43 = vld [vmem:[%s2684_s2 + $0xa8] sm:$0xff] (!%p180_p10)  ;;  %v1499_v44 = vld [vmem:[%s2684_s2 + $0xb0] sm:$0xff] (!%p180_p10)  ;;  %v1541_v45 = vld [vmem:[%s2683_s1 + $0x20] sm:$0xff] (!%p180_p10)  ;;  %s1472_s13 = sshll.u32 (!%p180_p10), %s202_s12, 7  ;;  %s1345_s23 = scalar_lea.sflag (!%p180_p10), [#allocation3], %s202_s12 }
  0x15   : > { %1860 = vmatprep.subr.bf16.mxu0 (!%p180_p10), %v1859_v5  ;;  %v1542_v46 = vld [vmem:[%s2683_s1 + $0x28] sm:$0xff] (!%p180_p10)  ;;  %v1500_v47 = vld [vmem:[%s2684_s2 + $0xb8] sm:$0xff] (!%p180_p10)  ;;  %v1501_v48 = vld [vmem:[%s2684_s2 + $0xc0] sm:$0xff] (!%p180_p10)  ;;  %s2584_s14 = scalar_lea.vmem (!%p180_p10), [#allocation2], %s1472_s13 }
  0x16   : > { %1862 = vmatpush3.bf16.msra.mxu0 (!%p180_p10), %v1859_v5  ;;  %v1899_v49 = vpack.c.bf16 (!%p180_p10), %v1542_v46, %v1541_v45  ;;  %v1502_v50 = vld [vmem:[%s2684_s2 + $0xc8] sm:$0xff] (!%p180_p10)  ;;  %v1503_v51 = vld [vmem:[%s2684_s2 + $0xd0] sm:$0xff] (!%p180_p10)  ;;  %v1504_v52 = vld [vmem:[%s2684_s2 + $0xd8] sm:$0xff] (!%p180_p10) }
  0x17   : > { %v1505_v53 = vld [vmem:[%s2684_s2 + $0xe0] sm:$0xff] (!%p180_p10)  ;;  %v1506_v54 = vld [vmem:[%s2684_s2 + $0xe8] sm:$0xff] (!%p180_p10)  ;;  %v1507_v55 = vld [vmem:[%s2684_s2 + $0xf0] sm:$0xff] (!%p180_p10) }
  0x18   : > { %s206_s24 = scalar_select %p205_p12, %s2101_s19, 1  ;;  %v1508_v56 = vld [vmem:[%s2684_s2 + $0xf8] sm:$0xff]  ;;  %v365_v57 = vld [vmem:[%s2684_s2 + $0x60] sm:$0xff]  ;;  %v366_v58 = vld [vmem:[%s2684_s2 + $0x68] sm:$0xff] }
  0x19   : > { %v367_v59 = vld [vmem:[%s2684_s2 + $0x70] sm:$0xff]  ;;  %v368_v60 = vld [vmem:[%s2684_s2 + $0x78] sm:$0xff]  ;;  %v353_v61 = vld [vmem:[%s2684_s2] sm:$0xff] }
  0x1a   : > { %s1959_s27 = smul.u32 96, %s206_s24  ;;  %v354_v62 = vld [vmem:[%s2684_s2 + $0x8] sm:$0xff]  ;;  %v355_v63 = vld [vmem:[%s2684_s2 + $0x10] sm:$0xff]  ;;  %v356_v0 = vld [vmem:[%s2684_s2 + $0x18] sm:$0xff] }
  0x1b   : > { %v357_v1 = vld [vmem:[%s2684_s2 + $0x20] sm:$0xff]  ;;  %v358_v2 = vld [vmem:[%s2684_s2 + $0x28] sm:$0xff]  ;;  %v359_v3 = vld [vmem:[%s2684_s2 + $0x30] sm:$0xff] }
  0x1c   : > { %s209_s8 = scalar_lea.vmem %s2682_s0, %s1959_s27  ;;  %v360_v4 = vld [vmem:[%s2684_s2 + $0x38] sm:$0xff]  ;;  %v361_v5 = vld [vmem:[%s2684_s2 + $0x40] sm:$0xff] }
  0x1d   : > { %s212_s9 = scalar_lea.vmem %s209_s8, %s1474_s30 }
  0x1e   : > { %v2237_v6 = vld [vmem:[%s212_s9] sm:$0xff]  ;;  %v2239_v7 = vld [vmem:[%s212_s9 + $0x8] sm:$0xff]  ;;  %v2241_v8 = vld [vmem:[%s212_s9 + $0x18] sm:$0xff] }
  0x1f   : > { %1711 = vmatprep.mubr.msk.f32.mxu1 %vm223_vm0, %v2237_v6  ;;  %1695 = vmatprep.mubr.msk.f32.mxu0 %vm223_vm0, %v2237_v6  ;;  %v2253_v9 = vld [vmem:[%s212_s9 + $0x20] sm:$0xff]  ;;  %v2257_v10 = vld [vmem:[%s212_s9 + $0x30] sm:$0xff]  ;;  %v2265_v11 = vld [vmem:[%s212_s9 + $0x38] sm:$0xff] }
  0x20   : > { %1712 = vmatmul.mubr.msk.f32.vlgmr.msra.gmra.mrb[0].mxu1 %vm223_vm0, %v2239_v7  ;;  %1696 = vmatmul.mubr.msk.f32.vlgmr.msra.gmra.mrb[0].mxu0 %vm223_vm0, %v2239_v7  ;;  %v2269_v12 = vld [vmem:[%s212_s9 + $0x48] sm:$0xff]  ;;  %v2277_v13 = vld [vmem:[%s212_s9 + $0x50] sm:$0xff] }
  0x21   : > { %1714 = vmatprep.mubr.msk.f32.mxu1 %vm223_vm0, %v2241_v8  ;;  %1698 = vmatprep.mubr.msk.f32.mxu0 %vm223_vm0, %v2241_v8 }
  0x24   : > { %1715 = vmatmul.mubr.msk.f32.gmra.mrb[2].mxu1 %vm223_vm0, %v2253_v9  ;;  %1699 = vmatmul.mubr.msk.f32.gmra.mrb[2].mxu0 %vm223_vm0, %v2253_v9 }
  0x25   : > { %1717 = vmatprep.mubr.msk.f32.mxu1 %vm223_vm0, %v2257_v10  ;;  %1701 = vmatprep.mubr.msk.f32.mxu0 %vm223_vm0, %v2257_v10 }
  0x28   : > { %1718 = vmatmul.mubr.msk.f32.gmra.mrb[4].mxu1 %vm223_vm0, %v2265_v11  ;;  %1702 = vmatmul.mubr.msk.f32.gmra.mrb[4].mxu0 %vm223_vm0, %v2265_v11 }
  0x29   : > { %1720 = vmatprep.mubr.msk.f32.mxu1 %vm223_vm0, %v2269_v12  ;;  %1704 = vmatprep.mubr.msk.f32.mxu0 %vm223_vm0, %v2269_v12 }
  0x2c   : > { %1721 = vmatmul.mubr.msk.f32.gmra.mrb[6].mxu1 %vm223_vm0, %v2277_v13  ;;  %1705 = vmatmul.mubr.msk.f32.gmra.mrb[6].mxu0 %vm223_vm0, %v2277_v13 }
  0x2d   : > { %1739 = vmatprep.mubr.msk.f32.mxu1 %vm494_vm1, %v1493_v14  ;;  %1779 = vmatprep.mubr.msk.f32.mxu0 %vm494_vm1, %v353_v61  ;;  %v1216_v14 = vld [vmem:[%s2685_s3 + $0x8] sm:$0xff]  ;;  %v1558_v61 = vld [vmem:[%s2684_s2 + $0x138] sm:$0xff] }
  0xf3   : > { %v1713_v15 = vpop.f32.mrb[0].mxu1  ;;  %v1697_v16 = vpop.f32.mrb[0].mxu0 }
  0xf4   : > { %v438_v17 = vpop.f32.mrb[1].mxu1  ;;  %v314_v18 = vpop.f32.mrb[1].mxu0 }
  0xf5   : > { %v1867_v19 = vpack.c.bf16 %v1713_v15, %v438_v17  ;;  %v1883_v20 = vpack.c.bf16 %v1697_v16, %v314_v18  ;;  %v1220_v15 = vld [vmem:[%s2685_s3 + $0x28] sm:$0xff]  ;;  %v1219_v16 = vld [vmem:[%s2685_s3 + $0x20] sm:$0xff]  ;;  %v1222_v17 = vld [vmem:[%s2685_s3 + $0x38] sm:$0xff] }
  0xf6   : > { %v1221_v18 = vld [vmem:[%s2685_s3 + $0x30] sm:$0xff] }
  0xf7   : > { %v1716_v21 = vpop.f32.mrb[2].mxu1  ;;  %1868 = vmatprep.subr.bf16.mxu1 %v1867_v19  ;;  %1884 = vmatprep.subr.bf16.mxu0 %v1883_v20  ;;  %v1700_v22 = vpop.f32.mrb[2].mxu0 }
  0xf8   : > { %v448_v23 = vpop.f32.mrb[3].mxu1  ;;  %1870 = vmatpush3.bf16.msra.mxu1 %v1867_v19  ;;  %1886 = vmatpush3.bf16.msra.mxu0 %v1883_v20  ;;  %v324_v24 = vpop.f32.mrb[3].mxu0  ;;  %v1224_v19 = vld [vmem:[%s2685_s3 + $0x48] sm:$0xff] }
  0xf9   : > { %v1871_v25 = vpack.c.bf16 %v1716_v21, %v448_v23  ;;  %v1887_v26 = vpack.c.bf16 %v1700_v22, %v324_v24  ;;  %v1226_v21 = vld [vmem:[%s2685_s3 + $0x58] sm:$0xff]  ;;  %v1225_v22 = vld [vmem:[%s2685_s3 + $0x50] sm:$0xff]  ;;  %v1228_v23 = vld [vmem:[%s2685_s3 + $0x68] sm:$0xff] }
  0xfa   : > { %v1227_v24 = vld [vmem:[%s2685_s3 + $0x60] sm:$0xff] }
  0xfb   : > { %v1719_v27 = vpop.f32.mrb[4].mxu1  ;;  %1872 = vmatprep.subr.bf16.mxu1 %v1871_v25  ;;  %1888 = vmatprep.subr.bf16.mxu0 %v1887_v26  ;;  %v1703_v28 = vpop.f32.mrb[4].mxu0 }
  0xfc   : > { %v458_v29 = vpop.f32.mrb[5].mxu1  ;;  %1874 = vmatpush3.bf16.msra.mxu1 %v1871_v25  ;;  %1890 = vmatpush3.bf16.msra.mxu0 %v1887_v26  ;;  %v334_v30 = vpop.f32.mrb[5].mxu0  ;;  %v1230_v25 = vld [vmem:[%s2685_s3 + $0x78] sm:$0xff] }
  0xfd   : > { %v1875_v31 = vpack.c.bf16 %v1719_v27, %v458_v29  ;;  %v1891_v32 = vpack.c.bf16 %v1703_v28, %v334_v30 }
  0xff   : > { %v1722_v33 = vpop.f32.mrb[6].mxu1  ;;  %1876 = vmatprep.subr.bf16.mxu1 %v1875_v31  ;;  %v1706_v34 = vpop.f32.mrb[6].mxu0  ;;  %1892 = vmatprep.subr.bf16.mxu0 %v1891_v32 }
 0x100   : > { %v468_v35 = vpop.f32.mrb[7].mxu1  ;;  %1878 = vmatpush3.bf16.msra.mxu1 %v1875_v31  ;;  %v344_v36 = vpop.f32.mrb[7].mxu0  ;;  %1894 = vmatpush3.bf16.msra.mxu0 %v1891_v32 }
 0x101   : > { %v1879_v37 = vpack.c.bf16 %v1722_v33, %v468_v35  ;;  %v1895_v38 = vpack.c.bf16 %v1706_v34, %v344_v36 }
 0x103   : > { %1880 = vmatprep.subr.bf16.mxu1 %v1879_v37  ;;  %1896 = vmatprep.subr.bf16.mxu0 %v1895_v38 }
 0x104   : > { %1882 = vmatpush3.bf16.msra.mxu1 %v1879_v37  ;;  %1898 = vmatpush3.bf16.msra.mxu0 %v1895_v38 }
 0x105   : > { %1919 = vmatprep.subr.bf16.mxu1 %v1883_v20 }
 0x107   : > { %1740 = vmatmul.mubr.msk.f32.vlgmr.msra.gmra.mrb[8].mxu1 %vm494_vm1, %v1494_v39  ;;  %1780 = vmatmul.mubr.msk.f32.vlgmr.msra.gmra.mrb[8].mxu0 %vm494_vm1, %v354_v62  ;;  %v1559_v62 = vld [vmem:[%s2684_s2 + $0x140] sm:$0xff] }
 0x108   : > { %1742 = vmatprep.mubr.msk.f32.mxu1 %vm494_vm1, %v1495_v40  ;;  %1923 = vmatpush3.bf16.msra.mxu1 %v1883_v20  ;;  %v1223_v20 = vld [vmem:[%s2685_s3 + $0x40] sm:$0xff] }
 0x109   : > { %1920 = vmatprep.subr.bf16.mxu1 %v1887_v26  ;;  %1782 = vmatprep.mubr.msk.f32.mxu0 %vm494_vm1, %v355_v63  ;;  %v1560_v63 = vld [vmem:[%s2684_s2 + $0x148] sm:$0xff] }
 0x10b   : > { %1743 = vmatmul.mubr.msk.f32.gmra.mrb[10].mxu1 %vm494_vm1, %v1496_v41  ;;  %1783 = vmatmul.mubr.msk.f32.gmra.mrb[10].mxu0 %vm494_vm1, %v356_v0  ;;  %v1561_v0 = vld [vmem:[%s2684_s2 + $0x150] sm:$0xff] }
 0x10c   : > { %1745 = vmatprep.mubr.msk.f32.mxu1 %vm494_vm1, %v1497_v42  ;;  %1924 = vmatpush3.bf16.msra.mxu1 %v1887_v26  ;;  %v1229_v26 = vld [vmem:[%s2685_s3 + $0x70] sm:$0xff] }
 0x10d   : > { %1921 = vmatprep.subr.bf16.mxu1 %v1891_v32  ;;  %1785 = vmatprep.mubr.msk.f32.mxu0 %vm494_vm1, %v357_v1  ;;  %v1562_v1 = vld [vmem:[%s2684_s2 + $0x158] sm:$0xff] }
 0x10f   : > { %1746 = vmatmul.mubr.msk.f32.gmra.mrb[12].mxu1 %vm494_vm1, %v1498_v43  ;;  %1786 = vmatmul.mubr.msk.f32.gmra.mrb[12].mxu0 %vm494_vm1, %v358_v2  ;;  %v1563_v2 = vld [vmem:[%s2684_s2 + $0x160] sm:$0xff] }
 0x110   : > { %1748 = vmatprep.mubr.msk.f32.mxu1 %vm494_vm1, %v1499_v44  ;;  %1925 = vmatpush3.bf16.msra.mxu1 %v1891_v32 }
 0x111   : > { %1922 = vmatprep.subr.bf16.mxu1 %v1895_v38  ;;  %1788 = vmatprep.mubr.msk.f32.mxu0 %vm494_vm1, %v359_v3  ;;  %v1564_v3 = vld [vmem:[%s2684_s2 + $0x168] sm:$0xff] }
 0x113   : > { %1749 = vmatmul.mubr.msk.f32.gmra.mrb[14].mxu1 %vm494_vm1, %v1500_v47  ;;  %1789 = vmatmul.mubr.msk.f32.gmra.mrb[14].mxu0 %vm494_vm1, %v360_v4  ;;  %v1565_v4 = vld [vmem:[%s2684_s2 + $0x170] sm:$0xff] }
 0x114   : > { %1751 = vmatprep.mubr.msk.f32.mxu1 %vm494_vm1, %v1501_v48  ;;  %1926 = vmatpush3.bf16.msra.mxu1 %v1895_v38 }
 0x115   : > { %1900 = vmatprep.subr.bf16.mxu1 %v1899_v49  ;;  %1791 = vmatprep.mubr.msk.f32.mxu0 %vm494_vm1, %v361_v5  ;;  %v1566_v5 = vld [vmem:[%s2684_s2 + $0x178] sm:$0xff] }
 0x117   : > { %1752 = vmatmul.mubr.msk.f32.gmra.mrb[16].mxu1 %vm494_vm1, %v1502_v50 }
 0x118   : > { %1754 = vmatprep.mubr.msk.f32.mxu1 %vm494_vm1, %v1503_v51 }
 0x11b   : > { %1755 = vmatmul.mubr.msk.f32.gmra.mrb[18].mxu1 %vm494_vm1, %v1504_v52 }
 0x11c   : > { %1757 = vmatprep.mubr.msk.f32.mxu1 %vm494_vm1, %v1505_v53 }
 0x11f   : > { %1758 = vmatmul.mubr.msk.f32.gmra.mrb[20].mxu1 %vm494_vm1, %v1506_v54 }
 0x120   : > { %1760 = vmatprep.mubr.msk.f32.mxu1 %vm494_vm1, %v1507_v55  ;;  %v1552_v55 = vld [vmem:[%s2684_s2 + $0x108] sm:$0xff] }
 0x123   : > { %1761 = vmatmul.mubr.msk.f32.gmra.mrb[22].mxu1 %vm494_vm1, %v1508_v56  ;;  %v1553_v56 = vld [vmem:[%s2684_s2 + $0x110] sm:$0xff] }
 0x124   : > { %1797 = vmatprep.mubr.msk.f32.mxu1 %vm494_vm1, %v365_v57  ;;  %v1554_v57 = vld [vmem:[%s2684_s2 + $0x118] sm:$0xff] }
 0x127   : > { %1798 = vmatmul.mubr.msk.f32.vlgmr.msra.gmra.mrb[20].mxu1 %vm494_vm1, %v366_v58  ;;  %v1555_v58 = vld [vmem:[%s2684_s2 + $0x120] sm:$0xff] }
 0x128   : > { %1800 = vmatprep.mubr.msk.f32.mxu1 %vm494_vm1, %v367_v59  ;;  %1902 = vmatpush3.bf16.msra.mxu1 %v1899_v49  ;;  %v1556_v59 = vld [vmem:[%s2684_s2 + $0x128] sm:$0xff] }
 0x12b   : > { %1801 = vmatmul.mubr.msk.f32.gmra.mrb[22].mxu1 %vm494_vm1, %v368_v60  ;;  %v1557_v60 = vld [vmem:[%s2684_s2 + $0x130] sm:$0xff] }
 0x12c   : > { %1807 = vmatprep.mubr.msk.f32.mxu1 %vm223_vm0, %v2237_v6  ;;  %v362_v6 = vld [vmem:[%s2684_s2 + $0x48] sm:$0xff] }
 0x12d   : > { %1792 = vmatmul.mubr.msk.f32.gmra.mrb[16].mxu0 %vm494_vm1, %v362_v6 }
 0x12f   : > { %1808 = vmatmul.mubr.msk.f32.vlgmr.msra.gmra.mrb[24].mxu1 %vm223_vm0, %v2239_v7  ;;  %v363_v7 = vld [vmem:[%s2684_s2 + $0x50] sm:$0xff] }
 0x130   : > { %1810 = vmatprep.mubr.msk.f32.mxu1 %vm223_vm0, %v2241_v8  ;;  %v364_v8 = vld [vmem:[%s2684_s2 + $0x58] sm:$0xff]  ;;  %1794 = vmatprep.mubr.msk.f32.mxu0 %vm494_vm1, %v363_v7 }
 0x131   : > { %1795 = vmatmul.mubr.msk.f32.gmra.mrb[18].mxu0 %vm494_vm1, %v364_v8 }
 0x133   : > { %1811 = vmatmul.mubr.msk.f32.gmra.mrb[26].mxu1 %vm223_vm0, %v2253_v9  ;;  %v1551_v9 = vld [vmem:[%s2684_s2 + $0x100] sm:$0xff] }
 0x134   : > { %1813 = vmatprep.mubr.msk.f32.mxu1 %vm223_vm0, %v2257_v10  ;;  %1835 = vmatprep.mubr.msk.f32.mxu0 %vm494_vm1, %v1551_v9  ;;  %v1217_v10 = vld [vmem:[%s2685_s3 + $0x10] sm:$0xff] }
 0x137   : > { %1814 = vmatmul.mubr.msk.f32.gmra.mrb[28].mxu1 %vm223_vm0, %v2265_v11  ;;  %v1215_v11 = vld [vmem:[%s2685_s3] sm:$0xff] }
 0x138   : > { %1816 = vmatprep.mubr.msk.f32.mxu1 %vm223_vm0, %v2269_v12  ;;  %v2115_v12 = vmov 0  }
 0x139   : > { %2046 = vset.pattern.permute.xlu1 %v2115_v12  ;;  %2045 = vset.pattern.permute.xlu0 %v2115_v12 }
 0x13a   : > { %1243 = vperm.xlu1 %2046, %v1217_v10   ;;  %1233 = vperm.xlu0 %2045, %v1215_v11  }
 0x13b   : > { %1817 = vmatmul.mubr.msk.f32.gmra.mrb[30].mxu1 %vm223_vm0, %v2277_v13  ;;  %v1218_v13 = vld [vmem:[%s2685_s3 + $0x18] sm:$0xff] }
 0x13e   : > { %1248 = vperm.xlu1 %2046, %v1218_v13   ;;  %1238 = vperm.xlu0 %2045, %v1216_v14  }
 0x142   : > { %1258 = vperm.xlu1 %2046, %v1220_v15   ;;  %1253 = vperm.xlu0 %2045, %v1219_v16  }
 0x146   : > { %1268 = vperm.xlu1 %2046, %v1222_v17   ;;  %1263 = vperm.xlu0 %2045, %v1221_v18  }
 0x14a   : > { %1278 = vperm.xlu1 %2046, %v1224_v19   ;;  %1273 = vperm.xlu0 %2045, %v1223_v20  }
 0x14e   : > { %1288 = vperm.xlu1 %2046, %v1226_v21   ;;  %1283 = vperm.xlu0 %2045, %v1225_v22  }
 0x152   : > { %1298 = vperm.xlu1 %2046, %v1228_v23   ;;  %1293 = vperm.xlu0 %2045, %v1227_v24  }
 0x156   : > { %1308 = vperm.xlu1 %2046, %v1230_v25   ;;  %1303 = vperm.xlu0 %2045, %v1229_v26  }
 0x1b9   : > { %v1244_v6 = vpop.permute.xlu1 %1243  ;;  %v1234_v7 = vpop.permute.xlu0 %1233 }
 0x1bd   : > { %v1249_v8 = vpop.permute.xlu1 %1248  ;;  %v1239_v9 = vpop.permute.xlu0 %1238 }
 0x1c1   : > { %v1259_v10 = vpop.permute.xlu1 %1258  ;;  %v1254_v12 = vpop.permute.xlu0 %1253 }
 0x1c5   : > { %v1269_v21 = vpop.permute.xlu1 %1268  ;;  %v1264_v23 = vpop.permute.xlu0 %1263 }
 0x1da   : > { %v2487_v27 = vpop.f32.mrb[8].mxu1 }
 0x1db   : > { %v2489_v28 = vpop.f32.mrb[9].mxu1 }
 0x1de   : > { %v2491_v29 = vpop.f32.mrb[10].mxu1 }
 0x1df   : > { %v2493_v30 = vpop.f32.mrb[11].mxu1 }
 0x1e2   : > { %v2495_v31 = vpop.f32.mrb[12].mxu1 }
 0x1e3   : > { %v2497_v32 = vpop.f32.mrb[13].mxu1 }
 0x1e6   : > { %v2499_v33 = vpop.f32.mrb[14].mxu1 }
 0x1e7   : > { %v2501_v34 = vpop.f32.mrb[15].mxu1 }
 0x1ea   : > { %v2503_v35 = vpop.f32.mrb[16].mxu1 }
 0x1eb   : > { %v2505_v36 = vpop.f32.mrb[17].mxu1 }
 0x1ee   : > { %v2507_v37 = vpop.f32.mrb[18].mxu1 }
 0x1ef   : > { %v2509_v38 = vpop.f32.mrb[19].mxu1 }
 0x1fa   : > { %v2511_v39 = vpop.f32.mrb[20].mxu1 }
 0x1fb   : > { %v2513_v40 = vpop.f32.mrb[21].mxu1 }
 0x1fe   : > { %v2515_v41 = vpop.f32.mrb[22].mxu1 }
 0x1ff   : > { %v2517_v42 = vpop.f32.mrb[23].mxu1 }
 0x202   : > { %v1809_v43 = vpop.f32.mrb[24].mxu1 }
 0x203   : > { %v950_v44 = vpop.f32.mrb[25].mxu1 }
 0x204   : > { %v1903_v45 = vpack.c.bf16 %v1809_v43, %v950_v44  ;;  %v1279_v44 = vpop.permute.xlu1 %1278 }
 0x206   : > { %v1812_v46 = vpop.f32.mrb[26].mxu1  ;;  %1904 = vmatprep.subr.bf16.mxu0 %v1903_v45 }
 0x207   : > { %v960_v47 = vpop.f32.mrb[27].mxu1  ;;  %1906 = vmatpush3.bf16.msra.mxu0 %v1903_v45 }
 0x208   : > { %v1907_v48 = vpack.c.bf16 %v1812_v46, %v960_v47  ;;  %v1274_v46 = vpop.permute.xlu0 %1273 }
 0x20a   : > { %v1815_v49 = vpop.f32.mrb[28].mxu1  ;;  %1908 = vmatprep.subr.bf16.mxu0 %v1907_v48 }
 0x20b   : > { %v970_v50 = vpop.f32.mrb[29].mxu1  ;;  %1910 = vmatpush3.bf16.msra.mxu0 %v1907_v48 }
 0x20c   : > { %v1911_v51 = vpack.c.bf16 %v1815_v49, %v970_v50 }
 0x20e   : > { %v1818_v52 = vpop.f32.mrb[30].mxu1  ;;  %1912 = vmatprep.subr.bf16.mxu0 %v1911_v51 }
 0x20f   : > { %v980_v53 = vpop.f32.mrb[31].mxu1  ;;  %1914 = vmatpush3.bf16.msra.mxu0 %v1911_v51 }
 0x210   : > { %v1915_v54 = vpack.c.bf16 %v1818_v52, %v980_v53  ;;  %v1289_v53 = vpop.permute.xlu1 %1288 }
 0x212   : > { %1916 = vmatprep.subr.bf16.mxu0 %v1915_v54 }
 0x213   : > { %1918 = vmatpush3.bf16.msra.mxu0 %v1915_v54  ;;  %v1284_v54 = vpop.permute.xlu0 %1283 }
 0x216   : > { %1836 = vmatmul.mubr.msk.f32.vlgmr.msra.gmra.mrb[8].mxu0 %vm494_vm1, %v1552_v55 }
 0x217   : > { %1838 = vmatprep.mubr.msk.f32.mxu0 %vm494_vm1, %v1553_v56 }
 0x21a   : > { %1839 = vmatmul.mubr.msk.f32.gmra.mrb[10].mxu0 %vm494_vm1, %v1554_v57 }
 0x21b   : > { %1841 = vmatprep.mubr.msk.f32.mxu0 %vm494_vm1, %v1555_v58 }
 0x21e   : > { %1842 = vmatmul.mubr.msk.f32.gmra.mrb[12].mxu0 %vm494_vm1, %v1556_v59 }
 0x21f   : > { %1844 = vmatprep.mubr.msk.f32.mxu0 %vm494_vm1, %v1557_v60  ;;  %v1299_v60 = vpop.permute.xlu1 %1298 }
 0x222   : > { %1845 = vmatmul.mubr.msk.f32.gmra.mrb[14].mxu0 %vm494_vm1, %v1558_v61 }
 0x223   : > { %1847 = vmatprep.mubr.msk.f32.mxu0 %vm494_vm1, %v1559_v62  ;;  %v1294_v62 = vpop.permute.xlu0 %1293 }
 0x226   : > { %1848 = vmatmul.mubr.msk.f32.gmra.mrb[16].mxu0 %vm494_vm1, %v1560_v63 }
 0x227   : > { %1850 = vmatprep.mubr.msk.f32.mxu0 %vm494_vm1, %v1561_v0 }
 0x22a   : > { %1851 = vmatmul.mubr.msk.f32.gmra.mrb[18].mxu0 %vm494_vm1, %v1562_v1 }
 0x22b   : > { %1853 = vmatprep.mubr.msk.f32.mxu0 %vm494_vm1, %v1563_v2 }
 0x22e   : > { %1854 = vmatmul.mubr.msk.f32.gmra.mrb[20].mxu0 %vm494_vm1, %v1564_v3 }
 0x22f   : > { %1856 = vmatprep.mubr.msk.f32.mxu0 %vm494_vm1, %v1565_v4 }
 0x232   : > { %1857 = vmatmul.mubr.msk.f32.gmra.mrb[22].mxu0 %vm494_vm1, %v1566_v5  ;;  %v1309_v5 = vpop.permute.xlu1 %1308 }
 0x2e9   : > { %v1837_v11 = vpop.f32.mrb[8].mxu0 }
 0x2ea   : > { %v1927_v13 = vadd.f32 %v1837_v11, %v2487_v27  ;;  %v1120_v14 = vpop.f32.mrb[9].mxu0 }
 0x2eb   : > { %v1928_v15 = vadd.f32 %v1120_v14, %v2489_v28 }
 0x2ec   : > { %v1312_v16 = vadd.f32 %v1927_v13, %v1239_v9 }
 0x2ed   : > { %v1311_v17 = vadd.f32 %v1928_v15, %v1234_v7  ;;  %v1840_v18 = vpop.f32.mrb[10].mxu0 }
 0x2ee   : > { %1329 = vst.msk [vmem:[%s2584_s14 + $0x8] sm:$0xff] %vm1327_vm2, %v1312_v16  ;;  %v1929_v19 = vadd.f32 %v1840_v18, %v2491_v29  ;;  %v1130_v20 = vpop.f32.mrb[11].mxu0 }
 0x2ef   : > { %1328 = vst.msk [vmem:[%s2584_s14] sm:$0xff] %vm1327_vm2, %v1311_v17  ;;  %v1930_v22 = vadd.f32 %v1130_v20, %v2493_v30 }
 0x2f0   : > { %v1314_v24 = vadd.f32 %v1929_v19, %v1249_v8 }
 0x2f1   : > { %v1313_v25 = vadd.f32 %v1930_v22, %v1244_v6  ;;  %v1843_v26 = vpop.f32.mrb[12].mxu0  ;;  %v1304_v6 = vpop.permute.xlu0 %1303 }
 0x2f2   : > { %1331 = vst.msk [vmem:[%s2584_s14 + $0x18] sm:$0xff] %vm1327_vm2, %v1314_v24  ;;  %v1931_v27 = vadd.f32 %v1843_v26, %v2495_v31  ;;  %v1140_v28 = vpop.f32.mrb[13].mxu0 }
 0x2f3   : > { %1330 = vst.msk [vmem:[%s2584_s14 + $0x10] sm:$0xff] %vm1327_vm2, %v1313_v25  ;;  %v1932_v29 = vadd.f32 %v1140_v28, %v2497_v32 }
 0x2f4   : > { %v1316_v43 = vadd.f32 %v1931_v27, %v1259_v10 }
 0x2f5   : > { %v1315_v45 = vadd.f32 %v1932_v29, %v1254_v12  ;;  %v1846_v30 = vpop.f32.mrb[14].mxu0 }
 0x2f6   : > { %1333 = vst.msk [vmem:[%s2584_s14 + $0x28] sm:$0xff] %vm1327_vm2, %v1316_v43  ;;  %v1933_v47 = vadd.f32 %v1846_v30, %v2499_v33  ;;  %v1150_v48 = vpop.f32.mrb[15].mxu0 }
 0x2f7   : > { %1332 = vst.msk [vmem:[%s2584_s14 + $0x20] sm:$0xff] %vm1327_vm2, %v1315_v45  ;;  %v1934_v31 = vadd.f32 %v1150_v48, %v2501_v34 }
 0x2f8   : > { %v1318_v49 = vadd.f32 %v1933_v47, %v1269_v21 }
 0x2f9   : > { %v1317_v50 = vadd.f32 %v1934_v31, %v1264_v23  ;;  %v1849_v32 = vpop.f32.mrb[16].mxu0 }
 0x2fa   : > { %1335 = vst.msk [vmem:[%s2584_s14 + $0x38] sm:$0xff] %vm1327_vm2, %v1318_v49  ;;  %v1935_v51 = vadd.f32 %v1849_v32, %v2503_v35  ;;  %v1160_v52 = vpop.f32.mrb[17].mxu0 }
 0x2fb   : > { %1334 = vst.msk [vmem:[%s2584_s14 + $0x30] sm:$0xff] %vm1327_vm2, %v1317_v50  ;;  %v1936_v33 = vadd.f32 %v1160_v52, %v2505_v36 }
 0x2fc   : > { %v1320_v55 = vadd.f32 %v1935_v51, %v1279_v44 }
 0x2fd   : > { %v1319_v56 = vadd.f32 %v1936_v33, %v1274_v46  ;;  %v1852_v34 = vpop.f32.mrb[18].mxu0 }
 0x2fe   : > { %1337 = vst.msk [vmem:[%s2584_s14 + $0x48] sm:$0xff] %vm1327_vm2, %v1320_v55  ;;  %v1937_v57 = vadd.f32 %v1852_v34, %v2507_v37  ;;  %v1170_v58 = vpop.f32.mrb[19].mxu0 }
 0x2ff   : > { %1336 = vst.msk [vmem:[%s2584_s14 + $0x40] sm:$0xff] %vm1327_vm2, %v1319_v56  ;;  %v1938_v35 = vadd.f32 %v1170_v58, %v2509_v38 }
 0x300   : > { %v1322_v59 = vadd.f32 %v1937_v57, %v1289_v53 }
 0x301   : > { %v1321_v61 = vadd.f32 %v1938_v35, %v1284_v54  ;;  %v1855_v36 = vpop.f32.mrb[20].mxu0 }
 0x302   : > { %1339 = vst.msk [vmem:[%s2584_s14 + $0x58] sm:$0xff] %vm1327_vm2, %v1322_v59  ;;  %v1939_v63 = vadd.f32 %v1855_v36, %v2511_v39  ;;  %v1180_v0 = vpop.f32.mrb[21].mxu0 }
 0x303   : > { %1338 = vst.msk [vmem:[%s2584_s14 + $0x50] sm:$0xff] %vm1327_vm2, %v1321_v61  ;;  %v1940_v37 = vadd.f32 %v1180_v0, %v2513_v40 }
 0x304   : > { %v1324_v1 = vadd.f32 %v1939_v63, %v1299_v60 }
 0x305   : > { %v1323_v38 = vadd.f32 %v1940_v37, %v1294_v62  ;;  %v1858_v2 = vpop.f32.mrb[22].mxu0 }
 0x306   : > { %1341 = vst.msk [vmem:[%s2584_s14 + $0x68] sm:$0xff] %vm1327_vm2, %v1324_v1  ;;  %v1941_v3 = vadd.f32 %v1858_v2, %v2515_v41  ;;  %v1190_v4 = vpop.f32.mrb[23].mxu0 }
 0x307   : > { %1340 = vst.msk [vmem:[%s2584_s14 + $0x60] sm:$0xff] %vm1327_vm2, %v1323_v38  ;;  %v1942_v39 = vadd.f32 %v1190_v4, %v2517_v42 }
 0x308   : > { %v1326_v7 = vadd.f32 %v1941_v3, %v1309_v5 }
 0x309   : > { %v1325_v8 = vadd.f32 %v1942_v39, %v1304_v6 }
 0x30a   : > { %1343 = vst.msk [vmem:[%s2584_s14 + $0x78] sm:$0xff] %vm1327_vm2, %v1326_v7 }
 0x30b   : > { %1342 = vst.msk [vmem:[%s2584_s14 + $0x70] sm:$0xff] %vm1327_vm2, %v1325_v8 }
 0x30c   : > { %s1584_s24 = sshll.u32 %s2097_s18, 1  ;;  %s1585_s27 = sshll.u32 %s2101_s19, 5 }
 0x30d   : > { %s1357_s30 = sadd.s32 %s1585_s27, %s1584_s24  ;;  %s1376_s5 = sshll.u32 %s2584_s14, 4  ;;  %s1377_s5 = int_to_ptr.vmem [resolvable:$true] %s1376_s5 }
 0x30e   : > { %s1586_s6 = sshll.u32 %s1357_s30, 7  ;;  %s2116_s11 = smov 256  }
 0x30f   : > { %s1359_s10 = scalar_lea.hbm %s2686_s4, %s1586_s6  ;;  %1960 = sst [smem:[#allocation5]] (%p2199_p3), %s2116_s11 }
 0x310   : > { %s2117_s12 = smov 512   ;;  %s2118_s13 = smov 2  }
 0x311   : > { %1961 = sst [smem:[#allocation5 + $0x1]] (%p2199_p3), %s2117_s12  ;;  %s2119_s18 = smov 128  }
 0x312   : > { %1962 = sst [smem:[#allocation5 + $0x2]] (%p2199_p3), %s2118_s13  ;;  %s2120_s19 = smov 8  }
 0x313   : > { %1963 = sst [smem:[#allocation5 + $0x3]] (%p2199_p3), %s2119_s18  ;;  %s2121_s14 = smov [#allocation4]  }
 0x314   : > { %1964 = sst [smem:[#allocation5 + $0x4]] (%p2199_p3), %s2119_s18  ;;  %s2122_s24 = smov 0  }
 0x315   : > { %1965 = sst [smem:[#allocation5 + $0x5]] (%p2199_p3), %s2120_s19 }
 0x316   : > { %1966 = dma.general (%p2199_p3), %s1377_s5, 2048, %s1359_s10, %s1345_s23, %s2121_s14, [#allocation5], %s2122_s24, 0  }
 0x317 PF: > { %p1972_p13 = scmp.ge.s32.totalorder %s2113_s22, 2  ;;  %s1404_s27 = sand.u32 1, %s2085_s15  }
 0x318   : > { %s1405_s30 = scalar_lea.sflag [#allocation3], %s1404_s27 }
 0x319   : > { %p1969_p0 = pnand %p1972_p13, %p2208_p8 }
 0x31b   : > { %2080 = dma.done.wait (!%p1969_p0), %s1405_s30, 2048  }
 0x31c   : > { %2082 = vsyncadd (!%p1969_p0), %s1405_s30, 4294965248  ;;  %s17_s22 = sadd.s32 1, %s2113_s22   ;;  %s2689_s15 = smov %s2089_s16 }
 0x31d   : > { %p14_p1 = scmp.ge.s32.totalorder %s17_s22, 6   ;;  %s2690_s16 = smov %s2093_s17 }
 0x31e   : > { %s2691_s17 = smov %s2217_s7  ;;  %s2692_s18 = smov %s2105_s20 }
 0x31f   : > { %s2693_s19 = smov %s2109_s21  ;;  %s2694_s20 = smov %s2697_s25 }
 0x320   : > { %s2695_s21 = smov %s2701_s26  ;;  %16 = sbr.rel (!%p14_p1) target bundleno = 5 (0x5), region = 81 }
 0x327   :  { %1410 = vsyncpa [#allocation3], 1 }
 0x328   :  { %1412 = vsyncpa [#allocation3 + $0x1], 1 }

</bundles_post_ra>
